<compile_context>
chip_gen: v5e
topology: v5e:2x2
jax: 0.10.0
libtpu: 0.0.40
codegen_flags: <defaults>
</compile_context>

<pallas_src>
import functools

import jax
import jax.numpy as jnp
from jax.experimental import pallas as pl
from jax.experimental.pallas import tpu as pltpu

TPAD = 128  # lane-dense padded tag dimension used for the MXU / epilogue only


# ---------------------------------------------------------------------------
# Fused kernel: FC head (4 K-chunks on MXU) + masked-CE epilogue
# ---------------------------------------------------------------------------
def _fused_fc_loss_kernel(h0_ref, h1_ref, h2_ref, h3_ref, w_ref, b_ref,
                          lm_ref, tag_ref, part_ref, *, num_tag, m_total):
    i = pl.program_id(0)
    tm = h0_ref.shape[0]

    # ---- FC head: accumulate the 4 K-chunks on the MXU.
    # f32 -> bf16 cast happens here (VPU slot, hidden under activation DMA),
    # so the wrapper never makes an extra HBM pass over the hidden states.
    acc = jnp.dot(h0_ref[...].astype(jnp.bfloat16), w_ref[0],
                  preferred_element_type=jnp.float32)
    acc += jnp.dot(h1_ref[...].astype(jnp.bfloat16), w_ref[1],
                   preferred_element_type=jnp.float32)
    acc += jnp.dot(h2_ref[...].astype(jnp.bfloat16), w_ref[2],
                   preferred_element_type=jnp.float32)
    acc += jnp.dot(h3_ref[...].astype(jnp.bfloat16), w_ref[3],
                   preferred_element_type=jnp.float32)
    logits = acc + b_ref[...]                         # (tm, TPAD) f32

    # Narrow (num_tag-wide) writeback: no padded tag array in HBM, no slice pass.
    tag_ref[...] = logits[:, :num_tag]

    # ---- masked cross-entropy epilogue (rides the free VPU/EUP slots)
    lm = lm_ref[...]                                  # (tm, 2) int32: [label, mask]
    labels = lm[:, 0:1]
    raw_active = lm[:, 1:2] == 1
    # ragged last tile: rows past m_total hold garbage -> mask them out here
    row_id = i * tm + jax.lax.broadcasted_iota(jnp.int32, (tm, 1), 0)
    active = raw_active & (row_id < m_total)          # (tm, 1) bool

    col = jax.lax.broadcasted_iota(jnp.int32, logits.shape, 1)
    valid_col = col < num_tag                         # mask zero-padded tag columns
    masked_logits = jnp.where(valid_col, logits, jnp.float32(-1e30))
    m = jnp.max(masked_logits, axis=-1, keepdims=True)
    lse = jnp.log(jnp.sum(jnp.exp(masked_logits - m), axis=-1, keepdims=True)) + m
    onehot = (col == labels).astype(jnp.float32)
    logit_at_label = jnp.sum(onehot * logits, axis=-1, keepdims=True)
    # jnp.where (not *) so NaN/Inf garbage in padded rows can never corrupt sums
    nll = jnp.where(active, lse - logit_at_label, jnp.float32(0.0))

    nll_sum = jnp.sum(nll)
    cnt_sum = jnp.sum(active.astype(jnp.float32))

    # Per-tile partials into a tiny (8, 128) tile -> grid axis stays "parallel"
    # (no SMEM running accumulator => both TensorCores usable on v7x).
    prow = jax.lax.broadcasted_iota(jnp.int32, (8, TPAD), 0)
    pcol = jax.lax.broadcasted_iota(jnp.int32, (8, TPAD), 1)
    part_ref[...] = jnp.where((prow == 0) & (pcol == 0), nll_sum,
                              jnp.where((prow == 0) & (pcol == 1), cnt_sum,
                                        jnp.float32(0.0)))


def _round_up(x, m):
    return ((x + m - 1) // m) * m


def _choose_tm(m, h):
    """Largest M-tile <= 1024 whose 4 double-buffered f32 activation streams
    fit a conservative VMEM budget (safe on v5e/v6e/v7x with explicit limit)."""
    m8 = max(_round_up(m, 8), 8)
    act_budget = 40 * 1024 * 1024
    for cand in (1024, 512, 256, 128, 64, 32, 16, 8):
        if cand <= m8 and 4 * cand * h * 4 * 2 <= act_budget:
            return cand
    return 8


@functools.partial(jax.jit, static_argnames=("num_tag",))
def entity_head_and_loss(h0, h1, h2, h3, weight, bias, labels, mask, *, num_tag):
    """h*: (B,S,H) f32 hidden states (last four, oldest first).
    weight: (4H, num_tag) f32, bias: (num_tag,) f32.
    labels/mask: (B,S) int32. Returns (tag (B,S,num_tag) f32, loss scalar f32)."""
    assert num_tag <= TPAD
    B, S, H = h0.shape
    M = B * S
    tm = _choose_tm(M, H)
    num_tiles = pl.cdiv(M, tm)

    # Hidden states go straight into the kernel: reshape of a contiguous
    # (B,S,H) array to (M,H) is free -- no wrapper-side cast/pad HBM passes.
    hs = [h.reshape(M, H) for h in (h0, h1, h2, h3)]

    # Tiny one-off parameter prep (weight is (4H, num_tag) ~ KBs).
    w4 = jnp.pad(weight.reshape(4, H, num_tag),
                 ((0, 0), (0, 0), (0, TPAD - num_tag))).astype(jnp.bfloat16)
    b2 = jnp.pad(bias.reshape(1, num_tag).astype(jnp.float32),
                 ((0, 0), (0, TPAD - num_tag)))

    # Labels + mask merged into a single (M, 2) int32 stream (one tiny DMA/tile).
    lm = jnp.stack([labels.reshape(M), mask.reshape(M)], axis=-1).astype(jnp.int32)

    kernel = functools.partial(_fused_fc_loss_kernel, num_tag=num_tag, m_total=M)

    tag_flat, partials = pl.pallas_call(
        kernel,
        out_shape=(
            jax.ShapeDtypeStruct((M, num_tag), jnp.float32),
            jax.ShapeDtypeStruct((num_tiles * 8, TPAD), jnp.float32),
        ),
        grid=(num_tiles,),
        in_specs=[
            pl.BlockSpec((tm, H), lambda i: (i, 0)),            # h0 tile (f32)
            pl.BlockSpec((tm, H), lambda i: (i, 0)),            # h1 tile
            pl.BlockSpec((tm, H), lambda i: (i, 0)),            # h2 tile
            pl.BlockSpec((tm, H), lambda i: (i, 0)),            # h3 tile
            pl.BlockSpec((4, H, TPAD), lambda i: (0, 0, 0)),    # weight, resident
            pl.BlockSpec((1, TPAD), lambda i: (0, 0)),          # bias, resident
            pl.BlockSpec((tm, 2), lambda i: (i, 0)),            # labels+mask tile
        ],
        out_specs=(
            pl.BlockSpec((tm, num_tag), lambda i: (i, 0)),      # narrow tag
            pl.BlockSpec((8, TPAD), lambda i: (i, 0)),          # per-tile partials
        ),
        compiler_params=pltpu.CompilerParams(
            # No cross-iteration state -> shardable across both TensorCores on
            # v7x; no-op on single-TC v5e/v6e.
            dimension_semantics=("parallel",),
            vmem_limit_bytes=48 * 1024 * 1024,
        ),
    )(hs[0], hs[1], hs[2], hs[3], w4, b2, lm)

    tag = tag_flat.reshape(B, S, num_tag)
    # Trivial scalar finalize in JAX.
    # NOTE: matches torch CrossEntropyLoss semantics: an all-ignored batch
    # yields 0/0 = NaN (intentionally not guarded).
    loss = jnp.sum(partials[:, 0]) / jnp.sum(partials[:, 1])
    return tag, loss


# ---------------------------------------------------------------------------
# EntityModel forward (JAX/Pallas)
# ---------------------------------------------------------------------------
class EntityModelPallas:
    def __init__(self, num_tag, hidden_size, key):
        self.num_tag = num_tag
        self.hidden_size = hidden_size
        initializer_range = 0.02
        # fc: Linear(hidden_size * 4, num_tag), weight ~ N(0, 0.02), bias = 0
        self.fc_weight = initializer_range * jax.random.normal(
            key, (hidden_size * 4, num_tag), dtype=jnp.float32
        )
        self.fc_bias = jnp.zeros((num_tag,), dtype=jnp.float32)

    def backbone_hidden_states(self, ids, n_states=5):
        # TODO(synk): pretrained microsoft/deberta-v3-large backbone has no Pallas
        # equivalent here; synthesize deterministic hidden states of the right shape.
        B, S = ids.shape
        key = jax.random.PRNGKey(42)
        keys = jax.random.split(key, n_states)
        return [
            jax.random.normal(k, (B, S, self.hidden_size), dtype=jnp.float32)
            for k in keys
        ]

    def forward(self, ids, mask, target_tag=None):
        B, S = ids.shape
        hidden_states = self.backbone_hidden_states(ids)
        h0, h1, h2, h3 = hidden_states[-4:]   # no jnp.concatenate: fused in-kernel

        labels = target_tag if target_tag is not None else jnp.zeros((B, S), jnp.int32)
        tag, loss = entity_head_and_loss(
            h0, h1, h2, h3, self.fc_weight, self.fc_bias,
            labels, mask, num_tag=self.num_tag,
        )
        if target_tag is not None:
            return tag, loss
        return tag


if __name__ == "__main__":
    B, S, H, NUM_TAG = 2, 8, 32, 5

    key = jax.random.PRNGKey(0)
    k_ids, k_tgt, k_fc = jax.random.split(key, 3)

    ids = jax.random.randint(k_ids, (B, S), 0, 1000, dtype=jnp.int32)
    mask = jnp.ones((B, S), dtype=jnp.int32).at[1, 6:].set(0)  # some padding
    target_tag = jax.random.randint(k_tgt, (B, S), 0, NUM_TAG, dtype=jnp.int32)

    model = EntityModelPallas(NUM_TAG, H, k_fc)

    tag, loss = model.forward(ids, mask, target_tag)
    jax.block_until_ready((tag, loss))

    assert tag.shape == (B, S, NUM_TAG)
    assert loss.shape == ()

    # inference path (no target)
    tag_only = model.forward(ids, mask)
    jax.block_until_ready(tag_only)
    assert tag_only.shape == (B, S, NUM_TAG)

    # light pure-JAX reference check (f32; kernel does bf16 MXU -> loose tolerance)
    hs = model.backbone_hidden_states(ids)
    cat = jnp.concatenate(hs[-4:], axis=-1).reshape(B * S, 4 * H)
    ref_logits = cat @ model.fc_weight + model.fc_bias
    ref_tag = ref_logits.reshape(B, S, NUM_TAG)
    logp = jax.nn.log_softmax(ref_logits, axis=-1)
    act = mask.reshape(-1) == 1
    nll = -jnp.take_along_axis(logp, target_tag.reshape(-1, 1), axis=-1)[:, 0]
    ref_loss = jnp.sum(jnp.where(act, nll, 0.0)) / jnp.sum(act)
    assert jnp.allclose(tag, ref_tag, atol=5e-2, rtol=5e-2)
    assert jnp.allclose(loss, ref_loss, atol=5e-2, rtol=5e-2)

    print("KERNEL_OK")
</pallas_src>

<mosaic_0001>
module attributes {stable_mosaic.version = 11 : i64} {
  func.func @_fused_fc_loss_kernel(%arg0: i32, %arg1: memref<16x32xf32, #tpu.memory_space<vmem>>, %arg2: memref<16x32xf32, #tpu.memory_space<vmem>>, %arg3: memref<16x32xf32, #tpu.memory_space<vmem>>, %arg4: memref<16x32xf32, #tpu.memory_space<vmem>>, %arg5: memref<4x32x128xbf16, #tpu.memory_space<vmem>>, %arg6: memref<1x128xf32, #tpu.memory_space<vmem>>, %arg7: memref<16x2xi32, #tpu.memory_space<vmem>>, %arg8: memref<16x5xf32, #tpu.memory_space<vmem>>, %arg9: memref<8x128xf32, #tpu.memory_space<vmem>>) attributes {dimension_semantics = [#tpu.dimension_semantics<parallel>], iteration_bounds = array<i64: 1>, scalar_prefetch = 0 : i64, scratch_operands = 0 : i64, tpu.core_type = #tpu.core_type<tc>, window_params = [{transform_indices = @transform_0, window_bounds = array<i64: 16, 32>}, {transform_indices = @transform_1, window_bounds = array<i64: 16, 32>}, {transform_indices = @transform_2, window_bounds = array<i64: 16, 32>}, {transform_indices = @transform_3, window_bounds = array<i64: 16, 32>}, {pipeline_mode = #tpu.pipeline_mode<synchronous>, transform_indices = @transform_4, window_bounds = array<i64: 4, 32, 128>}, {pipeline_mode = #tpu.pipeline_mode<synchronous>, transform_indices = @transform_5, window_bounds = array<i64: 1, 128>}, {transform_indices = @transform_6, window_bounds = array<i64: 16, 2>}, {transform_indices = @transform_7, window_bounds = array<i64: 16, 5>}, {transform_indices = @transform_8, window_bounds = array<i64: 8, 128>}]} {
    %c0 = arith.constant 0 : index
    %c0_0 = arith.constant 0 : index
    %0 = vector.load %arg1[%c0, %c0_0] : memref<16x32xf32, #tpu.memory_space<vmem>>, vector<16x32xf32>
    %1 = arith.truncf %0 : vector<16x32xf32> to vector<16x32xbf16>
    %c0_1 = arith.constant 0 : index
    %c0_2 = arith.constant 0 : index
    %c0_3 = arith.constant 0 : index
    %2 = vector.load %arg5[%c0_1, %c0_2, %c0_3] : memref<4x32x128xbf16, #tpu.memory_space<vmem>>, vector<1x32x128xbf16>
    %3 = vector.shape_cast %2 : vector<1x32x128xbf16> to vector<32x128xbf16>
    %cst = arith.constant dense<0.000000e+00> : vector<16x128xf32>
    %4 = tpu.matmul %1, %3, %cst {dimension_numbers = #tpu.dot_dimension_numbers<[1], [0], [0], [1], [0, 0, 1, 1], [], []>} : vector<16x32xbf16>, vector<32x128xbf16>, vector<16x128xf32> -> vector<16x128xf32>
    %c0_4 = arith.constant 0 : index
    %c0_5 = arith.constant 0 : index
    %5 = vector.load %arg2[%c0_4, %c0_5] : memref<16x32xf32, #tpu.memory_space<vmem>>, vector<16x32xf32>
    %6 = arith.truncf %5 : vector<16x32xf32> to vector<16x32xbf16>
    %c1 = arith.constant 1 : index
    %c0_6 = arith.constant 0 : index
    %c0_7 = arith.constant 0 : index
    %7 = vector.load %arg5[%c1, %c0_6, %c0_7] : memref<4x32x128xbf16, #tpu.memory_space<vmem>>, vector<1x32x128xbf16>
    %8 = vector.shape_cast %7 : vector<1x32x128xbf16> to vector<32x128xbf16>
    %cst_8 = arith.constant dense<0.000000e+00> : vector<16x128xf32>
    %9 = tpu.matmul %6, %8, %cst_8 {dimension_numbers = #tpu.dot_dimension_numbers<[1], [0], [0], [1], [0, 0, 1, 1], [], []>} : vector<16x32xbf16>, vector<32x128xbf16>, vector<16x128xf32> -> vector<16x128xf32>
    %10 = arith.addf %4, %9 : vector<16x128xf32>
    %c0_9 = arith.constant 0 : index
    %c0_10 = arith.constant 0 : index
    %11 = vector.load %arg3[%c0_9, %c0_10] : memref<16x32xf32, #tpu.memory_space<vmem>>, vector<16x32xf32>
    %12 = arith.truncf %11 : vector<16x32xf32> to vector<16x32xbf16>
    %c2 = arith.constant 2 : index
    %c0_11 = arith.constant 0 : index
    %c0_12 = arith.constant 0 : index
    %13 = vector.load %arg5[%c2, %c0_11, %c0_12] : memref<4x32x128xbf16, #tpu.memory_space<vmem>>, vector<1x32x128xbf16>
    %14 = vector.shape_cast %13 : vector<1x32x128xbf16> to vector<32x128xbf16>
    %cst_13 = arith.constant dense<0.000000e+00> : vector<16x128xf32>
    %15 = tpu.matmul %12, %14, %cst_13 {dimension_numbers = #tpu.dot_dimension_numbers<[1], [0], [0], [1], [0, 0, 1, 1], [], []>} : vector<16x32xbf16>, vector<32x128xbf16>, vector<16x128xf32> -> vector<16x128xf32>
    %16 = arith.addf %10, %15 : vector<16x128xf32>
    %c0_14 = arith.constant 0 : index
    %c0_15 = arith.constant 0 : index
    %17 = vector.load %arg4[%c0_14, %c0_15] : memref<16x32xf32, #tpu.memory_space<vmem>>, vector<16x32xf32>
    %18 = arith.truncf %17 : vector<16x32xf32> to vector<16x32xbf16>
    %c3 = arith.constant 3 : index
    %c0_16 = arith.constant 0 : index
    %c0_17 = arith.constant 0 : index
    %19 = vector.load %arg5[%c3, %c0_16, %c0_17] : memref<4x32x128xbf16, #tpu.memory_space<vmem>>, vector<1x32x128xbf16>
    %20 = vector.shape_cast %19 : vector<1x32x128xbf16> to vector<32x128xbf16>
    %cst_18 = arith.constant dense<0.000000e+00> : vector<16x128xf32>
    %21 = tpu.matmul %18, %20, %cst_18 {dimension_numbers = #tpu.dot_dimension_numbers<[1], [0], [0], [1], [0, 0, 1, 1], [], []>} : vector<16x32xbf16>, vector<32x128xbf16>, vector<16x128xf32> -> vector<16x128xf32>
    %22 = arith.addf %16, %21 : vector<16x128xf32>
    %c0_19 = arith.constant 0 : index
    %c0_20 = arith.constant 0 : index
    %23 = vector.load %arg6[%c0_19, %c0_20] : memref<1x128xf32, #tpu.memory_space<vmem>>, vector<1x128xf32>
    %24 = vector.broadcast %23 : vector<1x128xf32> to vector<16x128xf32>
    %25 = arith.addf %22, %24 : vector<16x128xf32>
    %26 = vector.extract_strided_slice %25 {offsets = [0, 0], sizes = [16, 5], strides = [1, 1]} : vector<16x128xf32> to vector<16x5xf32>
    %c0_21 = arith.constant 0 : index
    %c0_22 = arith.constant 0 : index
    %27 = vector.load %arg8[%c0_21, %c0_22] : memref<16x5xf32, #tpu.memory_space<vmem>>, vector<16x5xf32>
    tpu.vector_store %arg8[%c0_21, %c0_22], %26 {strides = array<i32>} : memref<16x5xf32, #tpu.memory_space<vmem>>, vector<16x5xf32>,
    %c0_23 = arith.constant 0 : index
    %c0_24 = arith.constant 0 : index
    %28 = vector.load %arg7[%c0_23, %c0_24] : memref<16x2xi32, #tpu.memory_space<vmem>>, vector<16x2xi32>
    %29 = vector.extract_strided_slice %28 {offsets = [0, 0], sizes = [16, 1], strides = [1, 1]} : vector<16x2xi32> to vector<16x1xi32>
    %30 = vector.extract_strided_slice %28 {offsets = [0, 1], sizes = [16, 1], strides = [1, 1]} : vector<16x2xi32> to vector<16x1xi32>
    %c1_i32 = arith.constant 1 : i32
    %31 = vector.broadcast %c1_i32 : i32 to vector<16x1xi32>
    %32 = arith.cmpi eq, %30, %31 : vector<16x1xi32>
    %c16_i32 = arith.constant 16 : i32
    %33 = arith.muli %arg0, %c16_i32 : i32
    %34 = tpu.iota {dimensions = array<i32: 0>} : vector<16x1xi32>
    %35 = vector.broadcast %33 : i32 to vector<16x1xi32>
    %36 = arith.addi %35, %34 : vector<16x1xi32>
    %c16_i32_25 = arith.constant 16 : i32
    %37 = vector.broadcast %c16_i32_25 : i32 to vector<16x1xi32>
    %38 = arith.cmpi slt, %36, %37 : vector<16x1xi32>
    %39 = arith.andi %32, %38 : vector<16x1xi1>
    %40 = tpu.iota {dimensions = array<i32: 1>} : vector<16x128xi32>
    %c5_i32 = arith.constant 5 : i32
    %41 = vector.broadcast %c5_i32 : i32 to vector<16x128xi32>
    %42 = arith.cmpi slt, %40, %41 : vector<16x128xi32>
    %cst_26 = arith.constant -1.000000e+30 : f32
    %43 = vector.broadcast %cst_26 : f32 to vector<16x128xf32>
    %44 = arith.select %42, %25, %43 : vector<16x128xi1>, vector<16x128xf32>
    %cst_27 = arith.constant dense<0xFF800000> : vector<16xf32>
    %45 = vector.multi_reduction <maximumf>, %44, %cst_27 [1] : vector<16x128xf32> to vector<16xf32>
    %46 = vector.shape_cast %45 : vector<16xf32> to vector<16x1xf32>
    %47 = vector.broadcast %46 : vector<16x1xf32> to vector<16x128xf32>
    %48 = arith.subf %44, %47 : vector<16x128xf32>
    %49 = math.exp %48 : vector<16x128xf32>
    %cst_28 = arith.constant dense<0.000000e+00> : vector<16xf32>
    %50 = vector.multi_reduction <add>, %49, %cst_28 [1] : vector<16x128xf32> to vector<16xf32>
    %51 = vector.shape_cast %50 : vector<16xf32> to vector<16x1xf32>
    %52 = math.log %51 : vector<16x1xf32>
    %53 = arith.addf %52, %46 : vector<16x1xf32>
    %54 = vector.broadcast %29 : vector<16x1xi32> to vector<16x128xi32>
    %55 = arith.cmpi eq, %40, %54 : vector<16x128xi32>
    %56 = arith.extui %55 : vector<16x128xi1> to vector<16x128xi32>
    %57 = arith.sitofp %56 : vector<16x128xi32> to vector<16x128xf32>
    %58 = arith.mulf %57, %25 : vector<16x128xf32>
    %cst_29 = arith.constant dense<0.000000e+00> : vector<16xf32>
    %59 = vector.multi_reduction <add>, %58, %cst_29 [1] : vector<16x128xf32> to vector<16xf32>
    %60 = vector.shape_cast %59 : vector<16xf32> to vector<16x1xf32>
    %61 = arith.subf %53, %60 : vector<16x1xf32>
    %cst_30 = arith.constant 0.000000e+00 : f32
    %62 = vector.broadcast %cst_30 : f32 to vector<16x1xf32>
    %63 = arith.select %39, %61, %62 : vector<16x1xi1>, vector<16x1xf32>
    %64 = vector.shape_cast %63 : vector<16x1xf32> to vector<1x16x1xf32>
    %cst_31 = arith.constant dense<0.000000e+00> : vector<1xf32>
    %65 = vector.multi_reduction <add>, %64, %cst_31 [1, 2] : vector<1x16x1xf32> to vector<1xf32>
    %66 = vector.shape_cast %65 : vector<1xf32> to vector<1x1x1xf32>
    %67 = vector.extract %66[0, 0, 0] : f32 from vector<1x1x1xf32>
    %68 = arith.extui %39 : vector<16x1xi1> to vector<16x1xi32>
    %69 = arith.sitofp %68 : vector<16x1xi32> to vector<16x1xf32>
    %70 = vector.shape_cast %69 : vector<16x1xf32> to vector<1x16x1xf32>
    %cst_32 = arith.constant dense<0.000000e+00> : vector<1xf32>
    %71 = vector.multi_reduction <add>, %70, %cst_32 [1, 2] : vector<1x16x1xf32> to vector<1xf32>
    %72 = vector.shape_cast %71 : vector<1xf32> to vector<1x1x1xf32>
    %73 = vector.extract %72[0, 0, 0] : f32 from vector<1x1x1xf32>
    %74 = tpu.iota {dimensions = array<i32: 0>} : vector<8x128xi32>
    %75 = tpu.iota {dimensions = array<i32: 1>} : vector<8x128xi32>
    %c0_i32 = arith.constant 0 : i32
    %76 = vector.broadcast %c0_i32 : i32 to vector<8x128xi32>
    %77 = arith.cmpi eq, %74, %76 : vector<8x128xi32>
    %c0_i32_33 = arith.constant 0 : i32
    %78 = vector.broadcast %c0_i32_33 : i32 to vector<8x128xi32>
    %79 = arith.cmpi eq, %75, %78 : vector<8x128xi32>
    %80 = arith.andi %77, %79 : vector<8x128xi1>
    %c0_i32_34 = arith.constant 0 : i32
    %81 = vector.broadcast %c0_i32_34 : i32 to vector<8x128xi32>
    %82 = arith.cmpi eq, %74, %81 : vector<8x128xi32>
    %c1_i32_35 = arith.constant 1 : i32
    %83 = vector.broadcast %c1_i32_35 : i32 to vector<8x128xi32>
    %84 = arith.cmpi eq, %75, %83 : vector<8x128xi32>
    %85 = arith.andi %82, %84 : vector<8x128xi1>
    %cst_36 = arith.constant 0.000000e+00 : f32
    %86 = vector.broadcast %73 : f32 to vector<8x128xf32>
    %87 = vector.broadcast %cst_36 : f32 to vector<8x128xf32>
    %88 = arith.select %85, %86, %87 : vector<8x128xi1>, vector<8x128xf32>
    %89 = vector.broadcast %67 : f32 to vector<8x128xf32>
    %90 = arith.select %80, %89, %88 : vector<8x128xi1>, vector<8x128xf32>
    %c0_37 = arith.constant 0 : index
    %c0_38 = arith.constant 0 : index
    %91 = vector.load %arg9[%c0_37, %c0_38] : memref<8x128xf32, #tpu.memory_space<vmem>>, vector<8x128xf32>
    tpu.vector_store %arg9[%c0_37, %c0_38], %90 {strides = array<i32>} : memref<8x128xf32, #tpu.memory_space<vmem>>, vector<8x128xf32>,
    return
  }
  func.func @transform_0(%arg0: i32) -> (i32, i32) {
    %c0_i32 = arith.constant 0 : i32
    %c0_i32_0 = arith.constant 0 : i32
    return %arg0, %c0_i32 : i32, i32
  }
  func.func @transform_1(%arg0: i32) -> (i32, i32) {
    %c0_i32 = arith.constant 0 : i32
    %c0_i32_0 = arith.constant 0 : i32
    return %arg0, %c0_i32 : i32, i32
  }
  func.func @transform_2(%arg0: i32) -> (i32, i32) {
    %c0_i32 = arith.constant 0 : i32
    %c0_i32_0 = arith.constant 0 : i32
    return %arg0, %c0_i32 : i32, i32
  }
  func.func @transform_3(%arg0: i32) -> (i32, i32) {
    %c0_i32 = arith.constant 0 : i32
    %c0_i32_0 = arith.constant 0 : i32
    return %arg0, %c0_i32 : i32, i32
  }
  func.func @transform_4(%arg0: i32) -> (i32, i32, i32) {
    %c0_i32 = arith.constant 0 : i32
    %c0_i32_0 = arith.constant 0 : i32
    %c0_i32_1 = arith.constant 0 : i32
    %c0_i32_2 = arith.constant 0 : i32
    return %c0_i32, %c0_i32_0, %c0_i32_1 : i32, i32, i32
  }
  func.func @transform_5(%arg0: i32) -> (i32, i32) {
    %c0_i32 = arith.constant 0 : i32
    %c0_i32_0 = arith.constant 0 : i32
    %c0_i32_1 = arith.constant 0 : i32
    return %c0_i32, %c0_i32_0 : i32, i32
  }
  func.func @transform_6(%arg0: i32) -> (i32, i32) {
    %c0_i32 = arith.constant 0 : i32
    %c0_i32_0 = arith.constant 0 : i32
    return %arg0, %c0_i32 : i32, i32
  }
  func.func @transform_7(%arg0: i32) -> (i32, i32) {
    %c0_i32 = arith.constant 0 : i32
    %c0_i32_0 = arith.constant 0 : i32
    return %arg0, %c0_i32 : i32, i32
  }
  func.func @transform_8(%arg0: i32) -> (i32, i32) {
    %c0_i32 = arith.constant 0 : i32
    %c0_i32_0 = arith.constant 0 : i32
    return %arg0, %c0_i32 : i32, i32
  }
}

</mosaic_0001>

<bundles_post_ra>
// kernel: entity_head_and_loss.1
= control target key start
LH: loop header
LB: loop body
LE: loop exit
PB: predicated region body
PF: predicated region fallthrough
CT: control target
= control target key end

     0   :  { %v398_v3 = vmov 0   ;;  %vm56_vm0 = vcmask 261120   ;;  %v195_v25 = vlaneseq  ;;  %vm187_vm1 = vcmask 39936   ;;  %s535_s4 = inlined_call_operand.vmem [shape: bf16[4,32,128], index: 4, kind: input, shape index: {}]   ;;  %s536_s1 = inlined_call_operand.vmem [shape: f32[16,32], index: 1, kind: input, shape index: {}]   ;;  %s537_s0 = inlined_call_operand.vmem [shape: f32[16,32], index: 0, kind: input, shape index: {}]   ;;  %s538_s2 = inlined_call_operand.vmem [shape: f32[16,32], index: 2, kind: input, shape index: {}]   ;;  %s539_s3 = inlined_call_operand.vmem [shape: f32[16,32], index: 3, kind: input, shape index: {}]   ;;  %s540_s6 = inlined_call_operand.vmem [shape: s32[16,2], index: 6, kind: input, shape index: {}]   ;;  %s541_s5 = inlined_call_operand.vmem [shape: f32[1,128], index: 5, kind: input, shape index: {}]   ;;  %s542_s7 = inlined_call_operand.vmem [shape: f32[16,5], index: 7, kind: output, shape index: {0}]   ;;  %s543_s8 = inlined_call_operand.vmem [shape: f32[8,128], index: 8, kind: output, shape index: {1}]  }
   0x1   :  { %v370_v0 = vld [vmem:[%s535_s4 + $0x18] sm:$0xff]  ;;  %v368_v1 = vld [vmem:[%s535_s4 + $0x8] sm:$0xff]  ;;  %382 = vset.pattern.permute.xlu1 %v398_v3  ;;  %388 = vset.pattern.permute.xlu0 %v398_v3  ;;  %v369_v5 = vld [vmem:[%s535_s4 + $0x10] sm:$0xff]  ;;  %v399_v44 = vmov 0.0   ;;  %vm260_vm7 = vcmask 7168  }
   0x2   :  { %v372_v2 = vld [vmem:[%s535_s4 + $0x28] sm:$0xff]  ;;  %v374_v4 = vld [vmem:[%s535_s4 + $0x38] sm:$0xff]  ;;  %v367_v6 = vld [vmem:[%s535_s4] sm:$0xff]  ;;  %66 = vmatpush.bf16.msra.mxu0 %v370_v0  ;;  %95 = vmatpush.bf16.msra.mxu1 %v368_v1  ;;  %v507_v30 = vand.u32 127, %v195_v25 }
   0x3   :  { %v371_v7 = vld [vmem:[%s535_s4 + $0x20] sm:$0xff]  ;;  %v373_v8 = vld [vmem:[%s535_s4 + $0x30] sm:$0xff]  ;;  %132 = vmatpush.bf16.msra.mxu2 %v372_v2  ;;  %171 = vmatpush.bf16.msra.mxu3 %v374_v4  ;;  %v37_v10 = vld [vmem:[%s536_s1 + $0x8] sm:$0xff] }
   0x4   :  { %v36_v9 = vld [vmem:[%s536_s1] sm:$0xff]  ;;  %v30_v12 = vld [vmem:[%s537_s0 + $0x8] sm:$0xff]  ;;  %vm207_vm2 = vcmp.lt.s32.totalorder %v507_v30, 5  ;;  %vm300_vm9 = vcmp.eq.s32.totalorder %v507_v30, 1  ;;  %vm298_vm10 = vcmp.eq.s32.totalorder %v507_v30, 0 }
   0x5   :  { %v29_v11 = vld [vmem:[%s537_s0] sm:$0xff]  ;;  %v104_v14 = vld [vmem:[%s538_s2 + $0x8] sm:$0xff]  ;;  %v38_v16 = vpack.c.bf16 %v37_v10, %v36_v9 }
   0x6   :  { %v103_v13 = vld [vmem:[%s538_s2] sm:$0xff]  ;;  %v31_v17 = vpack.c.bf16 %v30_v12, %v29_v11  ;;  %v143_v18 = vld [vmem:[%s539_s3 + $0x8] sm:$0xff]  ;;  %67 = vmatpush.bf16.msra.mxu0 %v369_v5  ;;  %96 = vmatpush.bf16.msra.mxu1 %v367_v6 }
   0x7   :  { %v142_v15 = vld [vmem:[%s539_s3] sm:$0xff]  ;;  %v105_v20 = vpack.c.bf16 %v104_v14, %v103_v13  ;;  %133 = vmatpush.bf16.msra.mxu2 %v371_v7  ;;  %172 = vmatpush.bf16.msra.mxu3 %v373_v8  ;;  %v503_v22 = vld [vmem:[%s540_s6 + $0x8] sm:$0xff] }
   0x8   :  { %v497_v19 = vld [vmem:[%s540_s6] sm:$0xff]  ;;  %v144_v21 = vpack.c.bf16 %v143_v18, %v142_v15  ;;  %vm193_vm6 = vcmp.eq.s32.totalorder %v503_v22, 1 }
   0x9   :  { %231 = vperm.xlu1 %382, %v497_v19   ;;  %327 = vmatmul.msk.bf16.vlgmr.msra.gmra.mxu0 %vm56_vm0, %v38_v16  ;;  %v389_v32 = vld [vmem:[%s541_s5] ss:$0 sm:$0xff]  ;;  %vm192_vm5 = vcmp.eq.s32.totalorder %v497_v19, 1  ;;  %v366_v6 = vsel %vm193_vm6, 1.0, %v399_v44 }
   0xa   :  { %336 = vmatmul.msk.bf16.vlgmr.msra.gmra.mxu1 %vm56_vm0, %v31_v17  ;;  %349 = vmatmul.msk.bf16.vlgmr.msra.gmra.mxu2 %vm56_vm0, %v105_v20  ;;  %v365_v4 = vsel %vm192_vm5, 1.0, %v399_v44 }
   0xb   :  { %362 = vmatmul.msk.bf16.vlgmr.msra.gmra.mxu3 %vm56_vm0, %v144_v21  ;;  %v383_v9 = vpack.i.bf16 %v366_v6, %v365_v4 }
  0x11   :  { %234 = vperm.xlu1 %382, %v503_v22  }
  0x7b   :  { %v232_v26 = vpop.permute.xlu1 %231 }
  0x7c   :  { %vm236_vm4 = vcmp.eq.s32.totalorder %v507_v30, %v232_v26 }
  0x7d   :  { %v363_v49 = vsel %vm236_vm4, 1.0, %v399_v44 }
  0x83   :  { %v235_v37 = vpop.permute.xlu1 %234 }
  0x84   :  { %vm237_vm3 = vcmp.eq.s32.totalorder %v507_v30, %v235_v37 }
  0x85   :  { %v364_v45 = vsel %vm237_vm3, 1.0, %v399_v44 }
  0x86   :  { %v69_v23 = vpop.f32.mrf.mxu0 }
  0x87   :  { %v98_v24 = vpop.f32.mrf.mxu1 }
  0x88   :  { %v99_v27 = vadd.f32 %v98_v24, %v69_v23 }
  0x8d   :  { %v135_v28 = vpop.f32.mrf.mxu2 }
  0x8e   :  { %v174_v29 = vpop.f32.mrf.mxu3  ;;  %v140_v31 = vadd.f32 %v135_v28, %v99_v27  ;;  %v71_v34 = vpop.f32.mrf.mxu0 }
  0x8f   :  { %v100_v35 = vpop.f32.mrf.mxu1 }
  0x90   :  { %v179_v33 = vadd.f32 %v174_v29, %v140_v31  ;;  %v101_v38 = vadd.f32 %v100_v35, %v71_v34 }
  0x92   :  { %v185_v36 = vadd.f32 %v389_v32, %v179_v33 }
  0x94   :  { %188 = vst.msk [vmem:[%s542_s7] sm:$0xff] %vm187_vm1, %v185_v36  ;;  %v208_v39 = vsel %vm207_vm2, %v185_v36, -1e+30  ;;  %v242_v50 = vmul.f32 %v363_v49, %v185_v36 }
  0x95   :  { %v137_v40 = vpop.f32.mrf.mxu2  ;;  %210 = vmax.xlane.f32.xlu0 %v208_v39 }
  0x96   :  { %v141_v41 = vadd.f32 %v137_v40, %v101_v38  ;;  %v176_v42 = vpop.f32.mrf.mxu3 }
  0x98   :  { %v180_v43 = vadd.f32 %v176_v42, %v141_v41 }
  0x9a   :  { %v186_v46 = vadd.f32 %v389_v32, %v180_v43 }
  0x9c   :  { %189 = vst.msk [vmem:[%s542_s7 + $0x8] sm:$0xff] %vm187_vm1, %v186_v46  ;;  %v209_v47 = vsel %vm207_vm2, %v186_v46, -1e+30  ;;  %v243_v48 = vmul.f32 %v364_v45, %v186_v46  ;;  %s400_s7 = smov 127  }
  0x9d   :  { %212 = vmax.xlane.f32.xlu0 %v209_v47 }
  0x9e   :  { %246 = vadd.xlane.f32.xlu1 %v243_v48 }
  0xa5   :  { %244 = vadd.xlane.f32.xlu0 %v242_v50 }
 0x108   :  { %v211_v51 = vpop.xlane.xlu0 %210 }
 0x109   :  { %v214_v52 = vsub.f32 %v208_v39, %v211_v51  ;;  %v196_v39 = vshrl.u32 %v195_v25, 7 }
 0x10b   :  { %v216_v53 = vmul.f32 1.442695, %v214_v52  ;;  %vm297_vm8 = vcmp.eq.s32.totalorder %v196_v39, 0 }
 0x10c   :  { %vm301_vm11 = vmand %vm297_vm8, %vm300_vm9 }
 0x10d   :  { %390 = vpow2.f32 %v216_v53  ;;  %vm299_vm12 = vmand %vm297_vm8, %vm298_vm10 }
 0x110   :  { %v213_v54 = vpop.xlane.xlu0 %212 }
 0x111   :  { %v215_v55 = vsub.f32 %v209_v47, %v213_v54  ;;  %v247_v8 = vpop.xlane.xlu1 %246 }
 0x113   :  { %v391_v56 = vpop.eup %390  ;;  %v218_v57 = vmul.f32 1.442695, %v215_v55 }
 0x114   :  { %220 = vadd.xlane.f32.xlu2 %v391_v56 }
 0x115   :  { %392 = vpow2.f32 %v218_v57 }
 0x118   :  { %v245_v0 = vpop.xlane.xlu0 %244 }
 0x11b   :  { %v393_v58 = vpop.eup %392 }
 0x11c   :  { %222 = vadd.xlane.f32.xlu2 %v393_v58 }
 0x187   :  { %v221_v59 = vpop.xlane.xlu2 %220 }
 0x188   :  { %394 = vlog2.f32 %v221_v59 }
 0x18e   :  { %v395_v60 = vpop.eup %394 }
 0x18f   :  { %v225_v61 = vmul.f32 0.6931472, %v395_v60  ;;  %v223_v62 = vpop.xlane.xlu2 %222 }
 0x190   :  { %396 = vlog2.f32 %v223_v62 }
 0x191   :  { %v228_v63 = vadd.f32 %v225_v61, %v211_v51 }
 0x193   :  { %v248_v1 = vsub.f32 %v228_v63, %v245_v0 }
 0x195   :  { %v250_v2 = vsel %vm192_vm5, %v248_v1, 0.0 }
 0x196   :  { %v397_v3 = vpop.eup %396  ;;  %254 = vrot.lane.b32.xlu2 %v250_v2, %s400_s7 }
 0x197   :  { %v227_v5 = vmul.f32 0.6931472, %v397_v3 }
 0x199   :  { %v229_v7 = vadd.f32 %v227_v5, %v213_v54 }
 0x19b   :  { %v249_v10 = vsub.f32 %v229_v7, %v247_v8 }
 0x19d   :  { %v251_v11 = vsel %vm193_vm6, %v249_v10, 0.0 }
 0x19e   :  { %256 = vrot.lane.b32.xlu0 %v251_v11, %s400_s7  ;;  %384 = vrot.lane.b32.xlu2 %v383_v9, %s400_s7 }
 0x1f0   :  { %v255_v12 = vpop.permute.xlu2 %254 }
 0x1f1   :  { %v261_v20 = vsel %vm260_vm7, %v255_v12, 0.0 }
 0x1f8   :  { %v385_v13 = vpop.permute.xlu2 %384 }
 0x1f9   :  { %v387_v14 = vunpack.i.h.bf16 %v385_v13  ;;  %v386_v15 = vunpack.i.l.bf16 %v385_v13 }
 0x1fb   :  { %v285_v16 = vsel %vm260_vm7, %v386_v15, 0.0  ;;  %v286_v17 = vsel %vm260_vm7, %v387_v14, 0.0 }
 0x1fc   :  { %v287_v18 = vadd.f32 %v286_v17, %v285_v16 }
 0x1fe   :  { %288 = vadd.xlane.f32.xlu2 %v287_v18 }
 0x210   :  { %v257_v19 = vpop.permute.xlu0 %256 }
 0x211   :  { %v262_v21 = vsel %vm260_vm7, %v257_v19, 0.0 }
 0x212   :  { %v263_v22 = vadd.f32 %v262_v21, %v261_v20 }
 0x214   :  { %264 = vadd.xlane.f32.xlu0 %v263_v22 }
 0x271   :  { %v289_v23 = vpop.xlane.xlu2 %288 }
 0x272   :  { %v290_v24 = vrot.slane %v289_v23, 4 }
 0x274   :  { %v291_v26 = vadd.f32 %v290_v24, %v289_v23 }
 0x276   :  { %v292_v27 = vrot.slane %v291_v26, 2 }
 0x278   :  { %v293_v32 = vadd.f32 %v292_v27, %v291_v26 }
 0x27a   :  { %v294_v35 = vrot.slane %v293_v32, 1 }
 0x27c   :  { %v295_v38 = vadd.f32 %v294_v35, %v293_v32 }
 0x287   :  { %v265_v28 = vpop.xlane.xlu0 %264 }
 0x288   :  { %v266_v29 = vrot.slane %v265_v28, 4 }
 0x28a   :  { %v267_v31 = vadd.f32 %v266_v29, %v265_v28 }
 0x28c   :  { %v268_v33 = vrot.slane %v267_v31, 2 }
 0x28e   :  { %v269_v34 = vadd.f32 %v268_v33, %v267_v31 }
 0x290   :  { %v270_v36 = vrot.slane %v269_v34, 1 }
 0x292   :  { %v271_v37 = vadd.f32 %v270_v36, %v269_v34 }
 0x294   :  { %375 = vpush %v271_v37 }
 0x295   :  { %377 = vpush %v295_v38 }
 0x2c5   :  { %s376_s18 = spop %375 }
 0x2c6   :  { %v304_v40 = vstv %s376_s18  ;;  %s378_s19 = spop %377 }
 0x2c7   :  { %v302_v41 = vstv %s378_s19 }
 0x2c8   :  { %v303_v42 = vsel %vm301_vm11, %v302_v41, 0.0 }
 0x2c9   :  { %v305_v43 = vsel %vm299_vm12, %v304_v40, %v303_v42 }
 0x2ca   :  { %306 = vst [vmem:[%s543_s8] sm:$0xff] %v305_v43 }

</bundles_post_ra>
